<compile_context>
chip_gen: v7x
topology: tpu7x:2x2x1
jax: 0.10.0
libtpu: 0.0.40
codegen_flags: <defaults>
</compile_context>

<pallas_src>
import jax
import jax.numpy as jnp
from jax.experimental import pallas as pl
from jax.experimental.pallas import tpu as pltpu


def ffn_kernel(x_ref, w1_ref, b1_ref, w2_ref, b2_ref, gamma_ref, beta_ref, o_ref):
    # x_ref: (TM, d_in) tile of the flattened (B*L, d_in) input, f32.
    x = x_ref[...].astype(jnp.float32)
    x_bf = x.astype(jnp.bfloat16)

    # w_1: Conv1d(d_in, d_hid, 1)  ->  h = relu(x @ W1^T + b1)   (bf16 MXU, f32 acc)
    h = jnp.dot(x_bf, w1_ref[...], preferred_element_type=jnp.float32) + b1_ref[...]
    h = jnp.maximum(h, 0.0)

    # w_2: Conv1d(d_hid, d_in, 1)  ->  y = h @ W2^T + b2         (bf16 MXU, f32 acc)
    y = jnp.dot(h.astype(jnp.bfloat16), w2_ref[...],
                preferred_element_type=jnp.float32) + b2_ref[...]

    # TODO(synk): nn.Dropout(0.1) omitted (identity / eval-mode semantics).

    # residual + LayerNorm over d_in, all in f32 on the un-quantized x.
    z = y + x
    mean = jnp.mean(z, axis=-1, keepdims=True)
    mean_sq = jnp.mean(z * z, axis=-1, keepdims=True)
    var = jnp.maximum(mean_sq - mean * mean, 0.0)        # one-pass variance
    norm = (z - mean) * jax.lax.rsqrt(var + 1e-5)
    o_ref[...] = (norm * gamma_ref[...] + beta_ref[...]).astype(o_ref.dtype)


def _round_up(a, b):
    return ((a + b - 1) // b) * b


def positionwise_feed_forward(x, w1, b1, w2, b2, gamma, beta, *, tile_m=512):
    """x: (B, L, d_in). w1: (d_hid, d_in), b1: (d_hid,), w2: (d_in, d_hid),
    b2/gamma/beta: (d_in,). Returns (B, L, d_in)."""
    B, L, d_in = x.shape
    d_hid = w1.shape[0]
    M = B * L

    # Row tile: big (default 512), clamped for tiny inputs, multiple of 8 (f32 sublane).
    tile = min(tile_m, _round_up(M, 8))
    tile = _round_up(tile, 8)
    M_pad = _round_up(M, tile)

    x2 = x.reshape(M, d_in)
    if M_pad != M:
        x2 = jnp.pad(x2, ((0, M_pad - M), (0, 0)))

    # Pre-transpose weights and ship them in bf16 (half the DMA bytes / VMEM).
    w1t = w1.T.astype(jnp.bfloat16)                  # (d_in, d_hid)
    w2t = w2.T.astype(jnp.bfloat16)                  # (d_hid, d_in)
    b1r = b1.reshape(1, d_hid).astype(jnp.float32)
    b2r = b2.reshape(1, d_in).astype(jnp.float32)
    gr = gamma.reshape(1, d_in).astype(jnp.float32)
    br = beta.reshape(1, d_in).astype(jnp.float32)

    grid = (M_pad // tile,)

    itemsize = jnp.dtype(x.dtype).itemsize
    cost = pl.CostEstimate(
        flops=2 * M_pad * d_in * d_hid * 2,                       # two matmuls
        transcendentals=M_pad,                                    # one rsqrt per row
        bytes_accessed=(M_pad * d_in * itemsize                   # x in
                        + M_pad * d_in * itemsize                 # out
                        + (w1t.size + w2t.size) * 2               # bf16 weights
                        + (b1r.size + b2r.size + gr.size + br.size) * 4),
    )

    out = pl.pallas_call(
        ffn_kernel,
        out_shape=jax.ShapeDtypeStruct((M_pad, d_in), x.dtype),
        grid_spec=pltpu.PrefetchScalarGridSpec(
            num_scalar_prefetch=0,
            grid=grid,
            in_specs=[
                pl.BlockSpec((tile, d_in), lambda i: (i, 0)),     # x tile
                pl.BlockSpec((d_in, d_hid), lambda i: (0, 0)),    # W1^T (bf16)
                pl.BlockSpec((1, d_hid), lambda i: (0, 0)),       # b1
                pl.BlockSpec((d_hid, d_in), lambda i: (0, 0)),    # W2^T (bf16)
                pl.BlockSpec((1, d_in), lambda i: (0, 0)),        # b2
                pl.BlockSpec((1, d_in), lambda i: (0, 0)),        # gamma
                pl.BlockSpec((1, d_in), lambda i: (0, 0)),        # beta
            ],
            out_specs=pl.BlockSpec((tile, d_in), lambda i: (i, 0)),
        ),
        compiler_params=pltpu.CompilerParams(
            dimension_semantics=("parallel",),
            vmem_limit_bytes=48 * 1024 * 1024,
        ),
        cost_estimate=cost,
    )(x2, w1t, b1r, w2t, b2r, gr, br)

    return out[:M].reshape(B, L, d_in)


if __name__ == "__main__":
    # Small shapes consistent with the module: x is (batch, seq, d_in).
    # d_in = 128 keeps the output lane dimension dense (full-vreg stores).
    B, L, d_in, d_hid = 2, 64, 128, 256

    key = jax.random.PRNGKey(0)
    kx, kw1, kb1, kw2, kb2 = jax.random.split(key, 5)

    x = jax.random.normal(kx, (B, L, d_in), dtype=jnp.float32)

    # Parameter shapes per nn.Conv1d(kernel_size=1) / nn.LayerNorm.
    w1 = jax.random.normal(kw1, (d_hid, d_in), dtype=jnp.float32) * 0.1
    b1 = jax.random.normal(kb1, (d_hid,), dtype=jnp.float32) * 0.1
    w2 = jax.random.normal(kw2, (d_in, d_hid), dtype=jnp.float32) * 0.1
    b2 = jax.random.normal(kb2, (d_in,), dtype=jnp.float32) * 0.1
    gamma = jnp.ones((d_in,), dtype=jnp.float32)
    beta = jnp.zeros((d_in,), dtype=jnp.float32)

    out = positionwise_feed_forward(x, w1, b1, w2, b2, gamma, beta)
    jax.block_until_ready(out)

    # Pure-JAX reference of the same math (bf16 matmul operands, f32 accumulate,
    # f32 residual + LayerNorm) — matches the kernel's numerics.
    x_bf = x.astype(jnp.bfloat16)
    h_ref = jnp.maximum(
        jnp.dot(x_bf, w1.T.astype(jnp.bfloat16),
                preferred_element_type=jnp.float32) + b1,
        0.0)
    y_ref = jnp.dot(h_ref.astype(jnp.bfloat16), w2.T.astype(jnp.bfloat16),
                    preferred_element_type=jnp.float32) + b2
    z_ref = y_ref + x
    mu = z_ref.mean(-1, keepdims=True)
    var = ((z_ref - mu) ** 2).mean(-1, keepdims=True)
    ref = (z_ref - mu) / jnp.sqrt(var + 1e-5) * gamma + beta

    assert jnp.allclose(out, ref, atol=2e-3, rtol=2e-3), "mismatch vs reference"

    print("KERNEL_OK")
</pallas_src>

<mosaic_0001>
module attributes {stable_mosaic.version = 11 : i64} {
  func.func @ffn_kernel(%arg0: i32, %arg1: memref<128x128xf32, #tpu.memory_space<vmem>>, %arg2: memref<128x256xbf16, #tpu.memory_space<vmem>>, %arg3: memref<1x256xf32, #tpu.memory_space<vmem>>, %arg4: memref<256x128xbf16, #tpu.memory_space<vmem>>, %arg5: memref<1x128xf32, #tpu.memory_space<vmem>>, %arg6: memref<1x128xf32, #tpu.memory_space<vmem>>, %arg7: memref<1x128xf32, #tpu.memory_space<vmem>>, %arg8: memref<128x128xf32, #tpu.memory_space<vmem>>) attributes {dimension_semantics = [#tpu.dimension_semantics<parallel>], iteration_bounds = array<i64: 1>, scalar_prefetch = 0 : i64, scratch_operands = 0 : i64, tpu.core_type = #tpu.core_type<tc>, window_params = [{transform_indices = @transform_0, window_bounds = array<i64: 128, 128>}, {pipeline_mode = #tpu.pipeline_mode<synchronous>, transform_indices = @transform_1, window_bounds = array<i64: 128, 256>}, {pipeline_mode = #tpu.pipeline_mode<synchronous>, transform_indices = @transform_2, window_bounds = array<i64: 1, 256>}, {pipeline_mode = #tpu.pipeline_mode<synchronous>, transform_indices = @transform_3, window_bounds = array<i64: 256, 128>}, {pipeline_mode = #tpu.pipeline_mode<synchronous>, transform_indices = @transform_4, window_bounds = array<i64: 1, 128>}, {pipeline_mode = #tpu.pipeline_mode<synchronous>, transform_indices = @transform_5, window_bounds = array<i64: 1, 128>}, {pipeline_mode = #tpu.pipeline_mode<synchronous>, transform_indices = @transform_6, window_bounds = array<i64: 1, 128>}, {transform_indices = @transform_7, window_bounds = array<i64: 128, 128>}]} {
    %c0 = arith.constant 0 : index
    %c0_0 = arith.constant 0 : index
    %0 = vector.load %arg1[%c0, %c0_0] : memref<128x128xf32, #tpu.memory_space<vmem>>, vector<128x128xf32>
    %1 = arith.truncf %0 : vector<128x128xf32> to vector<128x128xbf16>
    %c0_1 = arith.constant 0 : index
    %c0_2 = arith.constant 0 : index
    %2 = vector.load %arg2[%c0_1, %c0_2] : memref<128x256xbf16, #tpu.memory_space<vmem>>, vector<128x256xbf16>
    %cst = arith.constant dense<0.000000e+00> : vector<128x256xf32>
    %3 = tpu.matmul %1, %2, %cst {dimension_numbers = #tpu.dot_dimension_numbers<[1], [0], [0], [1], [0, 0, 1, 1], [], []>} : vector<128x128xbf16>, vector<128x256xbf16>, vector<128x256xf32> -> vector<128x256xf32>
    %c0_3 = arith.constant 0 : index
    %c0_4 = arith.constant 0 : index
    %4 = vector.load %arg3[%c0_3, %c0_4] : memref<1x256xf32, #tpu.memory_space<vmem>>, vector<1x256xf32>
    %5 = vector.broadcast %4 : vector<1x256xf32> to vector<128x256xf32>
    %6 = arith.addf %3, %5 : vector<128x256xf32>
    %cst_5 = arith.constant 0.000000e+00 : f32
    %7 = vector.broadcast %cst_5 : f32 to vector<128x256xf32>
    %8 = arith.maximumf %6, %7 : vector<128x256xf32>
    %9 = arith.truncf %8 : vector<128x256xf32> to vector<128x256xbf16>
    %c0_6 = arith.constant 0 : index
    %c0_7 = arith.constant 0 : index
    %10 = vector.load %arg4[%c0_6, %c0_7] : memref<256x128xbf16, #tpu.memory_space<vmem>>, vector<256x128xbf16>
    %cst_8 = arith.constant dense<0.000000e+00> : vector<128x128xf32>
    %11 = tpu.matmul %9, %10, %cst_8 {dimension_numbers = #tpu.dot_dimension_numbers<[1], [0], [0], [1], [0, 0, 1, 1], [], []>} : vector<128x256xbf16>, vector<256x128xbf16>, vector<128x128xf32> -> vector<128x128xf32>
    %c0_9 = arith.constant 0 : index
    %c0_10 = arith.constant 0 : index
    %12 = vector.load %arg5[%c0_9, %c0_10] : memref<1x128xf32, #tpu.memory_space<vmem>>, vector<1x128xf32>
    %13 = vector.broadcast %12 : vector<1x128xf32> to vector<128x128xf32>
    %14 = arith.addf %11, %13 : vector<128x128xf32>
    %15 = arith.addf %14, %0 : vector<128x128xf32>
    %cst_11 = arith.constant dense<0.000000e+00> : vector<128xf32>
    %16 = vector.multi_reduction <add>, %15, %cst_11 [1] : vector<128x128xf32> to vector<128xf32>
    %17 = vector.shape_cast %16 : vector<128xf32> to vector<128x1xf32>
    %cst_12 = arith.constant 1.280000e+02 : f32
    %18 = vector.broadcast %cst_12 : f32 to vector<128x1xf32>
    %19 = arith.divf %17, %18 : vector<128x1xf32>
    %20 = arith.mulf %15, %15 : vector<128x128xf32>
    %cst_13 = arith.constant dense<0.000000e+00> : vector<128xf32>
    %21 = vector.multi_reduction <add>, %20, %cst_13 [1] : vector<128x128xf32> to vector<128xf32>
    %22 = vector.shape_cast %21 : vector<128xf32> to vector<128x1xf32>
    %cst_14 = arith.constant 1.280000e+02 : f32
    %23 = vector.broadcast %cst_14 : f32 to vector<128x1xf32>
    %24 = arith.divf %22, %23 : vector<128x1xf32>
    %25 = arith.mulf %19, %19 : vector<128x1xf32>
    %26 = arith.subf %24, %25 : vector<128x1xf32>
    %cst_15 = arith.constant 0.000000e+00 : f32
    %27 = vector.broadcast %cst_15 : f32 to vector<128x1xf32>
    %28 = arith.maximumf %26, %27 : vector<128x1xf32>
    %29 = vector.broadcast %19 : vector<128x1xf32> to vector<128x128xf32>
    %30 = arith.subf %15, %29 : vector<128x128xf32>
    %cst_16 = arith.constant 9.99999974E-6 : f32
    %31 = vector.broadcast %cst_16 : f32 to vector<128x1xf32>
    %32 = arith.addf %28, %31 : vector<128x1xf32>
    %33 = math.rsqrt %32 : vector<128x1xf32>
    %34 = vector.broadcast %33 : vector<128x1xf32> to vector<128x128xf32>
    %35 = arith.mulf %30, %34 : vector<128x128xf32>
    %c0_17 = arith.constant 0 : index
    %c0_18 = arith.constant 0 : index
    %36 = vector.load %arg6[%c0_17, %c0_18] : memref<1x128xf32, #tpu.memory_space<vmem>>, vector<1x128xf32>
    %37 = vector.broadcast %36 : vector<1x128xf32> to vector<128x128xf32>
    %38 = arith.mulf %35, %37 : vector<128x128xf32>
    %c0_19 = arith.constant 0 : index
    %c0_20 = arith.constant 0 : index
    %39 = vector.load %arg7[%c0_19, %c0_20] : memref<1x128xf32, #tpu.memory_space<vmem>>, vector<1x128xf32>
    %40 = vector.broadcast %39 : vector<1x128xf32> to vector<128x128xf32>
    %41 = arith.addf %38, %40 : vector<128x128xf32>
    %c0_21 = arith.constant 0 : index
    %c0_22 = arith.constant 0 : index
    %42 = vector.load %arg8[%c0_21, %c0_22] : memref<128x128xf32, #tpu.memory_space<vmem>>, vector<128x128xf32>
    tpu.vector_store %arg8[%c0_21, %c0_22], %41 {strides = array<i32>} : memref<128x128xf32, #tpu.memory_space<vmem>>, vector<128x128xf32>,
    return
  }
  func.func @transform_0(%arg0: i32) -> (i32, i32) {
    %c0_i32 = arith.constant 0 : i32
    %c0_i32_0 = arith.constant 0 : i32
    return %arg0, %c0_i32 : i32, i32
  }
  func.func @transform_1(%arg0: i32) -> (i32, i32) {
    %c0_i32 = arith.constant 0 : i32
    %c0_i32_0 = arith.constant 0 : i32
    %c0_i32_1 = arith.constant 0 : i32
    return %c0_i32, %c0_i32_0 : i32, i32
  }
  func.func @transform_2(%arg0: i32) -> (i32, i32) {
    %c0_i32 = arith.constant 0 : i32
    %c0_i32_0 = arith.constant 0 : i32
    %c0_i32_1 = arith.constant 0 : i32
    return %c0_i32, %c0_i32_0 : i32, i32
  }
  func.func @transform_3(%arg0: i32) -> (i32, i32) {
    %c0_i32 = arith.constant 0 : i32
    %c0_i32_0 = arith.constant 0 : i32
    %c0_i32_1 = arith.constant 0 : i32
    return %c0_i32, %c0_i32_0 : i32, i32
  }
  func.func @transform_4(%arg0: i32) -> (i32, i32) {
    %c0_i32 = arith.constant 0 : i32
    %c0_i32_0 = arith.constant 0 : i32
    %c0_i32_1 = arith.constant 0 : i32
    return %c0_i32, %c0_i32_0 : i32, i32
  }
  func.func @transform_5(%arg0: i32) -> (i32, i32) {
    %c0_i32 = arith.constant 0 : i32
    %c0_i32_0 = arith.constant 0 : i32
    %c0_i32_1 = arith.constant 0 : i32
    return %c0_i32, %c0_i32_0 : i32, i32
  }
  func.func @transform_6(%arg0: i32) -> (i32, i32) {
    %c0_i32 = arith.constant 0 : i32
    %c0_i32_0 = arith.constant 0 : i32
    %c0_i32_1 = arith.constant 0 : i32
    return %c0_i32, %c0_i32_0 : i32, i32
  }
  func.func @transform_7(%arg0: i32) -> (i32, i32) {
    %c0_i32 = arith.constant 0 : i32
    %c0_i32_0 = arith.constant 0 : i32
    return %arg0, %c0_i32 : i32, i32
  }
}

</mosaic_0001>

<bundles_post_ra>
// kernel: tpu_custom_call.1
= control target key start
LH: loop header
LB: loop body
LE: loop exit
PB: predicated region body
PF: predicated region fallthrough
CT: control target
= control target key end

     0   :  { %12 = vsyncpa [#allocation3], 0  ;;  %s1632_s0 = inlined_call_operand.hbm [shape: f32[128,128], index: 0, kind: input, shape index: {}]   ;;  %s1633_s1 = inlined_call_operand.hbm [shape: bf16[128,256], index: 1, kind: input, shape index: {}]   ;;  %s1634_s2 = inlined_call_operand.vmem [shape: f32[1,256], index: 2, kind: input, shape index: {}]   ;;  %s1635_s3 = inlined_call_operand.hbm [shape: bf16[256,128], index: 3, kind: input, shape index: {}]   ;;  %s1636_s4 = inlined_call_operand.vmem [shape: f32[1,128], index: 4, kind: input, shape index: {}]   ;;  %s1637_s5 = inlined_call_operand.vmem [shape: f32[1,128], index: 5, kind: input, shape index: {}]   ;;  %s1638_s6 = inlined_call_operand.vmem [shape: f32[1,128], index: 6, kind: input, shape index: {}]   ;;  %s1639_s7 = inlined_call_operand.hbm [shape: f32[128,128], index: 7, kind: output, shape index: {}]  }
   0x1   :  { %13 = vsyncpa [#allocation6], 0 }
   0x2   :  { %14 = vsyncpa [#allocation4], 0  ;;  %s1189_s24 = smov [#allocation5]   ;;  %s1190_s26 = smov [#allocation2]  }
   0x3   :  { %s32_s25 = sshll.u32 %s1189_s24, 4  ;;  %s20_s27 = sshll.u32 %s1190_s26, 4  ;;  %s33_s25 = int_to_ptr.vmem [resolvable:$true] %s32_s25  ;;  %s1238_s27 = int_to_ptr.vmem [resolvable:$true] %s20_s27 }
   0x4   :  { %s1095_s30 = scalar_lea.hbm %s1633_s1, 2048 }
   0x5   :  { %p1096_p0 = scmp.ne.s32.totalorder %s1633_s1, %s1095_s30  ;;  %p1099_p1 = scmp.lt.u32.totalorder %s1095_s30, %s1633_s1 }
   0x7   :  { %p1101_p2 = pnand %p1099_p1, %p1096_p0 }
   0x9   :  { %1104 = shalt.err (!%p1101_p2)
}
   0xa   :  { %s1105_s12 = scalar_lea.vmem %s33_s25, 2048  ;;  %p1110_p4 = scmp.lt.s32.totalorder %s33_s25, %s33_s25 }
   0xb   :  { %p1106_p3 = scmp.ne.s32.totalorder %s33_s25, %s1105_s12  ;;  %p1111_p5 = scmp.lt.s32.totalorder %s1105_s12, %s1105_s12 }
   0xd   :  { %p1112_p6 = por %p1111_p5, %p1110_p4 }
   0xf   :  { %p1113_p7 = pnand %p1112_p6, %p1106_p3 }
  0x11   :  { %1116 = shalt.err (!%p1113_p7)
}
  0x12   :  { %s1191_s13 = smov 128   ;;  %s1192_s14 = smov 8  }
  0x13   :  { %38 = dma.hbm_to_vmem [thread:$0]  %s1633_s1, 2048, %s33_s25, [#allocation6], %s1191_s13, %s1191_s13, %s1192_s14  }
  0x14   :  { %s1117_s19 = scalar_lea.hbm %s1632_s0, 2048 }
  0x15   :  { %p1118_p8 = scmp.ne.s32.totalorder %s1632_s0, %s1117_s19  ;;  %p1121_p9 = scmp.lt.u32.totalorder %s1117_s19, %s1632_s0 }
  0x17   :  { %p1123_p10 = pnand %p1121_p9, %p1118_p8 }
  0x19   :  { %1126 = shalt.err (!%p1123_p10)
}
  0x1a   :  { %s1127_s24 = scalar_lea.vmem %s1238_s27, 2048  ;;  %p1132_p12 = scmp.lt.s32.totalorder %s1238_s27, %s1238_s27 }
  0x1b   :  { %p1128_p11 = scmp.ne.s32.totalorder %s1238_s27, %s1127_s24  ;;  %p1133_p13 = scmp.lt.s32.totalorder %s1127_s24, %s1127_s24 }
  0x1d   :  { %p1134_p0 = por %p1133_p13, %p1132_p12 }
  0x1f   :  { %p1135_p1 = pnand %p1134_p0, %p1128_p11 }
  0x21   :  { %1138 = shalt.err (!%p1135_p1)
}
  0x22   :  { %26 = dma.hbm_to_vmem [thread:$0]  %s1632_s0, 2048, %s1238_s27, [#allocation3], %s1191_s13, %s1191_s13, %s1192_s14  }
  0x23   :  { %s1193_s26 = smov [#allocation7]   ;;  %s1139_s8 = scalar_lea.hbm %s1635_s3, 2048 }
  0x24   :  { %s46_s28 = sshll.u32 %s1193_s26, 4  ;;  %p1140_p2 = scmp.ne.s32.totalorder %s1635_s3, %s1139_s8  ;;  %s47_s28 = int_to_ptr.vmem [resolvable:$true] %s46_s28 }
  0x25   :  { %p1143_p3 = scmp.lt.u32.totalorder %s1139_s8, %s1635_s3 }
  0x27   :  { %p1145_p4 = pnand %p1143_p3, %p1140_p2 }
  0x29   :  { %1148 = shalt.err (!%p1145_p4)
}
  0x2a   :  { %s1149_s15 = scalar_lea.vmem %s47_s28, 2048  ;;  %p1154_p6 = scmp.lt.s32.totalorder %s47_s28, %s47_s28 }
  0x2b   :  { %p1150_p5 = scmp.ne.s32.totalorder %s47_s28, %s1149_s15  ;;  %p1155_p7 = scmp.lt.s32.totalorder %s1149_s15, %s1149_s15 }
  0x2d   :  { %p1156_p8 = por %p1155_p7, %p1154_p6 }
  0x2f   :  { %p1157_p9 = pnand %p1156_p8, %p1150_p5 }
  0x31   :  { %1160 = shalt.err (!%p1157_p9)
}
  0x32   :  { %s1194_s0 = smov 64   ;;  %s1195_s27 = smov 4  }
  0x33   :  { %52 = dma.hbm_to_vmem [thread:$0]  %s1635_s3, 2048, %s47_s28, [#allocation6], %s1194_s0, %s1194_s0, %s1195_s27  }
  0x34   :  { %1183 = dma.done.wait [#allocation3], 2048  }
  0x35   :  { %1184 = vsyncadd [#allocation3], 4294965248 }
  0x36   :  { %1185 = dma.done.wait [#allocation6], 4096  }
  0x37   :  { %1186 = vsyncadd [#allocation6], 4294963200  ;;  %v1196_v0 = vmov 0   ;;  %v1023_v1 = vld [vmem:[#allocation5 + $0x4] ss:$8 sps:$4 sm:$0xff]   ;;  %v1051_v18 = vld [vmem:[#allocation7 + $0x50] sm:$0xff]   ;;  %v111_v57 = vlaneseq }
  0x38   :  { %233 = vmatprep.mubr.bf16.mxu0 %v1196_v0  ;;  %v1025_v2 = vld [vmem:[#allocation5] ss:$8 sps:$4 sm:$0xff]   ;;  %201 = vmatprep.subr.bf16.mxu0 %v1023_v1  ;;  %v1026_v3 = vld [vmem:[#allocation5 + $0x14] ss:$8 sps:$4 sm:$0xff]   ;;  %v1028_v4 = vld [vmem:[#allocation5 + $0x10] ss:$8 sps:$4 sm:$0xff]  }
  0x39   :  { %202 = vmatpush1.bf16.msra.mxu0 %v1025_v2  ;;  %v1029_v5 = vld [vmem:[#allocation5 + $0x24] ss:$8 sps:$4 sm:$0xff]   ;;  %v1031_v6 = vld [vmem:[#allocation5 + $0x20] ss:$8 sps:$4 sm:$0xff]   ;;  %v1032_v7 = vld [vmem:[#allocation5 + $0x34] ss:$8 sps:$4 sm:$0xff]  }
  0x3a   :  { %203 = vmatprep.subr.bf16.mxu0 %v1026_v3  ;;  %v1034_v8 = vld [vmem:[#allocation5 + $0x30] ss:$8 sps:$4 sm:$0xff]   ;;  %v1035_v9 = vld [vmem:[#allocation5 + $0x44] ss:$8 sps:$4 sm:$0xff]   ;;  %v1037_v10 = vld [vmem:[#allocation5 + $0x40] ss:$8 sps:$4 sm:$0xff]  }
  0x3b   :  { %v1038_v11 = vld [vmem:[#allocation5 + $0x54] ss:$8 sps:$4 sm:$0xff]   ;;  %v1047_v12 = vld [vmem:[#allocation7 + $0x40] sm:$0xff]   ;;  %v1040_v13 = vld [vmem:[#allocation5 + $0x50] ss:$8 sps:$4 sm:$0xff]   ;;  %v112_v58 = vshrl.u32 %v111_v57, 7 }
  0x3c   :  { %v1048_v14 = vld [vmem:[#allocation7] sm:$0xff]   ;;  %950 = vmatprep.subr.bf16.mxu1 %v1047_v12  ;;  %v1049_v16 = vld [vmem:[#allocation7 + $0x48] sm:$0xff]   ;;  %v1044_v20 = vld [vmem:[#allocation5 + $0x74] ss:$8 sps:$4 sm:$0xff]  }
  0x3d   :  { %204 = vmatpush1.bf16.msra.mxu0 %v1028_v4  ;;  %v1041_v15 = vld [vmem:[#allocation5 + $0x64] ss:$8 sps:$4 sm:$0xff]   ;;  %951 = vmatpush3.bf16.msra.mxu1 %v1048_v14  ;;  %v1043_v19 = vld [vmem:[#allocation5 + $0x60] ss:$8 sps:$4 sm:$0xff]   ;;  %v1052_v21 = vld [vmem:[#allocation7 + $0x10] sm:$0xff]   ;;  %v113_v59 = vsub.s32 0, %v112_v58 }
  0x3e   :  { %205 = vmatprep.subr.bf16.mxu0 %v1029_v5  ;;  %v1050_v17 = vld [vmem:[#allocation7 + $0x8] sm:$0xff]   ;;  %952 = vmatprep.subr.bf16.mxu1 %v1049_v16  ;;  %v1053_v22 = vld [vmem:[#allocation7 + $0x58] sm:$0xff]   ;;  %v1288_v24 = vld [vmem:[#allocation2] sm:$0xff]  ;;  %v117_v61 = vsub.s32 1, %v112_v58 }
  0x3f   :  { %v1046_v23 = vld [vmem:[#allocation5 + $0x70] ss:$8 sps:$4 sm:$0xff]   ;;  %v1290_v25 = vld [vmem:[#allocation2 + $0x8] sm:$0xff]  ;;  %v1055_v27 = vld [vmem:[#allocation7 + $0x60] sm:$0xff]  }
  0x40   :  { %v1054_v26 = vld [vmem:[#allocation7 + $0x18] sm:$0xff]   ;;  %v85_v28 = vpack.c.bf16 %v1290_v25, %v1288_v24  ;;  %v1056_v29 = vld [vmem:[#allocation7 + $0x20] sm:$0xff]   ;;  %v1057_v30 = vld [vmem:[#allocation7 + $0x68] sm:$0xff]  }
  0x41   :  { %206 = vmatpush1.bf16.msra.mxu0 %v1031_v6  ;;  %953 = vmatpush3.bf16.msra.mxu1 %v1050_v17  ;;  %v1295_v31 = vld [vmem:[#allocation2 + $0x10] sm:$0xff]  ;;  %v1297_v32 = vld [vmem:[#allocation2 + $0x18] sm:$0xff]  ;;  %v1302_v34 = vld [vmem:[#allocation2 + $0x20] sm:$0xff] }
  0x42   :  { %207 = vmatprep.subr.bf16.mxu0 %v1032_v7  ;;  %954 = vmatprep.subr.bf16.mxu1 %v1051_v18  ;;  %v86_v33 = vpack.c.bf16 %v1297_v32, %v1295_v31  ;;  %v1304_v35 = vld [vmem:[#allocation2 + $0x28] sm:$0xff]  ;;  %v1309_v37 = vld [vmem:[#allocation2 + $0x30] sm:$0xff]  ;;  %v1311_v38 = vld [vmem:[#allocation2 + $0x38] sm:$0xff] }
  0x43   :  { %v87_v36 = vpack.c.bf16 %v1304_v35, %v1302_v34  ;;  %v88_v39 = vpack.c.bf16 %v1311_v38, %v1309_v37  ;;  %v1316_v40 = vld [vmem:[#allocation2 + $0x40] sm:$0xff]  ;;  %v1318_v41 = vld [vmem:[#allocation2 + $0x48] sm:$0xff]  ;;  %v1323_v43 = vld [vmem:[#allocation2 + $0x50] sm:$0xff] }
  0x44   :  { %v89_v42 = vpack.c.bf16 %v1318_v41, %v1316_v40  ;;  %v1325_v44 = vld [vmem:[#allocation2 + $0x58] sm:$0xff]  ;;  %v1330_v46 = vld [vmem:[#allocation2 + $0x60] sm:$0xff]  ;;  %v1332_v47 = vld [vmem:[#allocation2 + $0x68] sm:$0xff] }
  0x45   :  { %208 = vmatpush1.bf16.msra.mxu0 %v1034_v8  ;;  %955 = vmatpush3.bf16.msra.mxu1 %v1052_v21  ;;  %v90_v45 = vpack.c.bf16 %v1325_v44, %v1323_v43  ;;  %v91_v48 = vpack.c.bf16 %v1332_v47, %v1330_v46  ;;  %v1337_v49 = vld [vmem:[#allocation2 + $0x70] sm:$0xff]  ;;  %v1339_v50 = vld [vmem:[#allocation2 + $0x78] sm:$0xff]  ;;  %v1058_v52 = vld [vmem:[#allocation7 + $0x28] sm:$0xff]  }
  0x46   :  { %209 = vmatprep.subr.bf16.mxu0 %v1035_v9  ;;  %956 = vmatprep.subr.bf16.mxu1 %v1053_v22  ;;  %v92_v51 = vpack.c.bf16 %v1339_v50, %v1337_v49  ;;  %v1059_v53 = vld [vmem:[#allocation7 + $0x70] sm:$0xff]   ;;  %v1061_v55 = vld [vmem:[#allocation7 + $0x78] sm:$0xff]   ;;  %v109_v60 = vld [vmem:[%s1634_s2] sm:$0x3] }
  0x47   :  { %v1060_v54 = vld [vmem:[#allocation7 + $0x30] sm:$0xff]   ;;  %v1062_v56 = vld [vmem:[#allocation7 + $0x38] sm:$0xff]   ;;  %v1346_v62 = vrot.slane %v109_v60, %v113_v59  ;;  %v1348_v63 = vrot.slane %v109_v60, %v117_v61 }
  0x49   :  { %210 = vmatpush1.bf16.msra.mxu0 %v1037_v10  ;;  %957 = vmatpush3.bf16.msra.mxu1 %v1054_v26 }
  0x4a   :  { %211 = vmatprep.subr.bf16.mxu0 %v1038_v11  ;;  %958 = vmatprep.subr.bf16.mxu1 %v1055_v27 }
  0x4d   :  { %212 = vmatpush1.bf16.msra.mxu0 %v1040_v13  ;;  %959 = vmatpush3.bf16.msra.mxu1 %v1056_v29 }
  0x4e   :  { %213 = vmatprep.subr.bf16.mxu0 %v1041_v15  ;;  %960 = vmatprep.subr.bf16.mxu1 %v1057_v30 }
  0x51   :  { %214 = vmatpush1.bf16.msra.mxu0 %v1043_v19  ;;  %961 = vmatpush3.bf16.msra.mxu1 %v1058_v52 }
  0x52   :  { %215 = vmatprep.subr.bf16.mxu0 %v1044_v20  ;;  %962 = vmatprep.subr.bf16.mxu1 %v1059_v53 }
  0x55   :  { %216 = vmatpush1.bf16.msra.mxu0 %v1046_v23  ;;  %963 = vmatpush3.bf16.msra.mxu1 %v1060_v54 }
  0x56   :  { %964 = vmatprep.subr.bf16.mxu1 %v1061_v55 }
  0x58   :  { %234 = vmatmul.mubr.bf16.vlgmr.msra.gmra.mrb[0].mxu0 %v85_v28 }
  0x59   :  { %243 = vmatprep.mubr.bf16.mxu0 %v1196_v0  ;;  %965 = vmatpush3.bf16.msra.mxu1 %v1062_v56 }
  0x60   :  { %244 = vmatmul.mubr.bf16.gmra.mrb[4].mxu0 %v86_v33 }
  0x61   :  { %253 = vmatprep.mubr.bf16.mxu0 %v1196_v0 }
  0x68   :  { %254 = vmatmul.mubr.bf16.gmra.mrb[8].mxu0 %v87_v36 }
  0x69   :  { %263 = vmatprep.mubr.bf16.mxu0 %v1196_v0 }
  0x70   :  { %264 = vmatmul.mubr.bf16.gmra.mrb[12].mxu0 %v88_v39 }
  0x71   :  { %273 = vmatprep.mubr.bf16.mxu0 %v1196_v0 }
  0x78   :  { %274 = vmatmul.mubr.bf16.gmra.mrb[16].mxu0 %v89_v42 }
  0x79   :  { %283 = vmatprep.mubr.bf16.mxu0 %v1196_v0 }
  0x80   :  { %284 = vmatmul.mubr.bf16.gmra.mrb[20].mxu0 %v90_v45 }
  0x81   :  { %293 = vmatprep.mubr.bf16.mxu0 %v1196_v0 }
  0x88   :  { %294 = vmatmul.mubr.bf16.gmra.mrb[24].mxu0 %v91_v48 }
  0x89   :  { %303 = vmatprep.mubr.bf16.mxu0 %v1196_v0 }
  0x90   :  { %304 = vmatmul.mubr.bf16.gmra.mrb[28].mxu0 %v92_v51 }
 0x12b   :  { %v235_v0 = vpop.f32.mrb[0].mxu0 }
 0x12c   :  { %v236_v1 = vadd.f32 %v235_v0, %v1346_v62  ;;  %v237_v2 = vpop.f32.mrb[1].mxu0 }
 0x12d   :  { %v238_v3 = vadd.f32 %v237_v2, %v1348_v63  ;;  %v239_v4 = vpop.f32.mrb[2].mxu0 }
 0x12e   :  { %v240_v5 = vadd.f32 %v239_v4, %v1346_v62  ;;  %v241_v6 = vpop.f32.mrb[3].mxu0  ;;  %v314_v8 = vmax.f32 %v236_v1, 0.0 }
 0x12f   :  { %v242_v7 = vadd.f32 %v241_v6, %v1348_v63  ;;  %v315_v10 = vmax.f32 %v238_v3, 0.0 }
 0x130   :  { %v316_v9 = vmax.f32 %v240_v5, 0.0 }
 0x131   :  { %v317_v11 = vmax.f32 %v242_v7, 0.0 }
 0x132   :  { %v346_v12 = vpack.c.bf16 %v316_v9, %v314_v8 }
 0x133   :  { %v245_v13 = vpop.f32.mrb[4].mxu0  ;;  %v347_v14 = vpack.c.bf16 %v317_v11, %v315_v10 }
 0x134   :  { %v246_v15 = vadd.f32 %v245_v13, %v1346_v62  ;;  %v247_v16 = vpop.f32.mrb[5].mxu0 }
 0x135   :  { %v248_v17 = vadd.f32 %v247_v16, %v1348_v63  ;;  %v249_v18 = vpop.f32.mrb[6].mxu0  ;;  %529 = vmatprep.mubr.bf16.mxu1 %v347_v14 }
 0x136   :  { %v250_v19 = vadd.f32 %v249_v18, %v1346_v62  ;;  %v251_v20 = vpop.f32.mrb[7].mxu0  ;;  %530 = vmatmul.mubr.bf16.vlgmr.msra.gmra.mrb[0].mxu1 %v346_v12  ;;  %v318_v22 = vmax.f32 %v246_v15, 0.0 }
 0x137   :  { %v252_v21 = vadd.f32 %v251_v20, %v1348_v63  ;;  %v319_v26 = vmax.f32 %v248_v17, 0.0 }
 0x138   :  { %v320_v23 = vmax.f32 %v250_v19, 0.0 }
 0x139   :  { %v321_v27 = vmax.f32 %v252_v21, 0.0 }
 0x13a   :  { %v348_v28 = vpack.c.bf16 %v320_v23, %v318_v22 }
 0x13b   :  { %v349_v29 = vpack.c.bf16 %v321_v27, %v319_v26  ;;  %v255_v30 = vpop.f32.mrb[8].mxu0 }
 0x13c   :  { %v256_v33 = vadd.f32 %v255_v30, %v1346_v62  ;;  %v257_v36 = vpop.f32.mrb[9].mxu0 }
 0x13d   :  { %v258_v39 = vadd.f32 %v257_v36, %v1348_v63  ;;  %v259_v42 = vpop.f32.mrb[10].mxu0  ;;  %537 = vmatprep.mubr.bf16.mxu1 %v349_v29 }
 0x13e   :  { %v322_v45 = vmax.f32 %v256_v33, 0.0  ;;  %v260_v48 = vadd.f32 %v259_v42, %v1346_v62  ;;  %v261_v51 = vpop.f32.mrb[11].mxu0  ;;  %538 = vmatmul.mubr.bf16.gmra.mrb[4].mxu1 %v348_v28 }
 0x13f   :  { %v323_v52 = vmax.f32 %v258_v39, 0.0  ;;  %v262_v53 = vadd.f32 %v261_v51, %v1348_v63 }
 0x140   :  { %v324_v54 = vmax.f32 %v260_v48, 0.0 }
 0x141   :  { %v325_v55 = vmax.f32 %v262_v53, 0.0 }
 0x142   :  { %v350_v56 = vpack.c.bf16 %v324_v54, %v322_v45 }
 0x143   :  { %v351_v57 = vpack.c.bf16 %v325_v55, %v323_v52  ;;  %v265_v58 = vpop.f32.mrb[12].mxu0 }
 0x144   :  { %v266_v59 = vadd.f32 %v265_v58, %v1346_v62  ;;  %v267_v60 = vpop.f32.mrb[13].mxu0 }
 0x145   :  { %v268_v61 = vadd.f32 %v267_v60, %v1348_v63  ;;  %v269_v0 = vpop.f32.mrb[14].mxu0  ;;  %545 = vmatprep.mubr.bf16.mxu1 %v351_v57 }
 0x146   :  { %v326_v1 = vmax.f32 %v266_v59, 0.0  ;;  %v270_v2 = vadd.f32 %v269_v0, %v1346_v62  ;;  %v271_v3 = vpop.f32.mrb[15].mxu0  ;;  %546 = vmatmul.mubr.bf16.gmra.mrb[8].mxu1 %v350_v56 }
 0x147   :  { %v327_v4 = vmax.f32 %v268_v61, 0.0  ;;  %v272_v5 = vadd.f32 %v271_v3, %v1348_v63 }
 0x148   :  { %v328_v6 = vmax.f32 %v270_v2, 0.0 }
 0x149   :  { %v329_v7 = vmax.f32 %v272_v5, 0.0 }
 0x14a   :  { %v352_v8 = vpack.c.bf16 %v328_v6, %v326_v1 }
 0x14b   :  { %v353_v9 = vpack.c.bf16 %v329_v7, %v327_v4  ;;  %v275_v10 = vpop.f32.mrb[16].mxu0 }
 0x14c   :  { %v276_v11 = vadd.f32 %v275_v10, %v1346_v62  ;;  %v277_v12 = vpop.f32.mrb[17].mxu0 }
 0x14d   :  { %v278_v13 = vadd.f32 %v277_v12, %v1348_v63  ;;  %v279_v14 = vpop.f32.mrb[18].mxu0  ;;  %553 = vmatprep.mubr.bf16.mxu1 %v353_v9 }
 0x14e   :  { %v330_v15 = vmax.f32 %v276_v11, 0.0  ;;  %v280_v16 = vadd.f32 %v279_v14, %v1346_v62  ;;  %v281_v17 = vpop.f32.mrb[19].mxu0  ;;  %554 = vmatmul.mubr.bf16.gmra.mrb[12].mxu1 %v352_v8 }
 0x14f   :  { %v331_v18 = vmax.f32 %v278_v13, 0.0  ;;  %v282_v19 = vadd.f32 %v281_v17, %v1348_v63 }
 0x150   :  { %v332_v20 = vmax.f32 %v280_v16, 0.0 }
 0x151   :  { %v333_v21 = vmax.f32 %v282_v19, 0.0 }
 0x152   :  { %v354_v22 = vpack.c.bf16 %v332_v20, %v330_v15 }
 0x153   :  { %v355_v23 = vpack.c.bf16 %v333_v21, %v331_v18  ;;  %v285_v26 = vpop.f32.mrb[20].mxu0  ;;  %v1385_v21 = vld [vmem:[%s1636_s4] ss:$0 sm:$0xff] }
 0x154   :  { %v286_v27 = vadd.f32 %v285_v26, %v1346_v62  ;;  %v287_v28 = vpop.f32.mrb[21].mxu0 }
 0x155   :  { %v288_v29 = vadd.f32 %v287_v28, %v1348_v63  ;;  %v289_v30 = vpop.f32.mrb[22].mxu0  ;;  %561 = vmatprep.mubr.bf16.mxu1 %v355_v23 }
 0x156   :  { %v334_v33 = vmax.f32 %v286_v27, 0.0  ;;  %v290_v36 = vadd.f32 %v289_v30, %v1346_v62  ;;  %v291_v39 = vpop.f32.mrb[23].mxu0  ;;  %562 = vmatmul.mubr.bf16.gmra.mrb[16].mxu1 %v354_v22 }
 0x157   :  { %v335_v42 = vmax.f32 %v288_v29, 0.0  ;;  %v292_v45 = vadd.f32 %v291_v39, %v1348_v63 }
 0x158   :  { %v336_v48 = vmax.f32 %v290_v36, 0.0 }
 0x159   :  { %v337_v51 = vmax.f32 %v292_v45, 0.0 }
 0x15a   :  { %v356_v52 = vpack.c.bf16 %v336_v48, %v334_v33 }
 0x15b   :  { %v357_v53 = vpack.c.bf16 %v337_v51, %v335_v42  ;;  %v295_v54 = vpop.f32.mrb[24].mxu0 }
 0x15c   :  { %v296_v55 = vadd.f32 %v295_v54, %v1346_v62  ;;  %v297_v56 = vpop.f32.mrb[25].mxu0 }
 0x15d   :  { %v298_v57 = vadd.f32 %v297_v56, %v1348_v63  ;;  %v299_v58 = vpop.f32.mrb[26].mxu0  ;;  %569 = vmatprep.mubr.bf16.mxu1 %v357_v53 }
 0x15e   :  { %v338_v59 = vmax.f32 %v296_v55, 0.0  ;;  %v300_v60 = vadd.f32 %v299_v58, %v1346_v62  ;;  %v301_v61 = vpop.f32.mrb[27].mxu0  ;;  %570 = vmatmul.mubr.bf16.gmra.mrb[20].mxu1 %v356_v52 }
 0x15f   :  { %v339_v0 = vmax.f32 %v298_v57, 0.0  ;;  %v302_v1 = vadd.f32 %v301_v61, %v1348_v63 }
 0x160   :  { %v340_v2 = vmax.f32 %v300_v60, 0.0 }
 0x161   :  { %v341_v3 = vmax.f32 %v302_v1, 0.0 }
 0x162   :  { %v358_v4 = vpack.c.bf16 %v340_v2, %v338_v59 }
 0x163   :  { %v359_v5 = vpack.c.bf16 %v341_v3, %v339_v0  ;;  %v305_v6 = vpop.f32.mrb[28].mxu0 }
 0x164   :  { %v306_v7 = vadd.f32 %v305_v6, %v1346_v62  ;;  %v307_v8 = vpop.f32.mrb[29].mxu0 }
 0x165   :  { %v308_v9 = vadd.f32 %v307_v8, %v1348_v63  ;;  %v309_v10 = vpop.f32.mrb[30].mxu0  ;;  %577 = vmatprep.mubr.bf16.mxu1 %v359_v5 }
 0x166   :  { %v342_v11 = vmax.f32 %v306_v7, 0.0  ;;  %v310_v12 = vadd.f32 %v309_v10, %v1346_v62  ;;  %v311_v13 = vpop.f32.mrb[31].mxu0  ;;  %578 = vmatmul.mubr.bf16.gmra.mrb[24].mxu1 %v358_v4 }
 0x167   :  { %v343_v14 = vmax.f32 %v308_v9, 0.0  ;;  %v312_v15 = vadd.f32 %v311_v13, %v1348_v63 }
 0x168   :  { %v344_v16 = vmax.f32 %v310_v12, 0.0 }
 0x169   :  { %v345_v17 = vmax.f32 %v312_v15, 0.0 }
 0x16a   :  { %v360_v18 = vpack.c.bf16 %v344_v16, %v342_v11 }
 0x16b   :  { %v361_v19 = vpack.c.bf16 %v345_v17, %v343_v14 }
 0x16d   :  { %585 = vmatprep.mubr.bf16.mxu1 %v361_v19 }
 0x16e   :  { %586 = vmatmul.mubr.bf16.gmra.mrb[28].mxu1 %v360_v18 }
 0x209   :  { %v966_v20 = vpop.f32.mrb[0].mxu1 }
 0x20a   :  { %v967_v22 = vpop.f32.mrb[1].mxu1 }
 0x20b   :  { %v968_v23 = vadd.f32 %v967_v22, %v966_v20  ;;  %v969_v62 = vpop.f32.mrb[2].mxu1 }
 0x20c   :  { %v970_v26 = vpop.f32.mrb[3].mxu1 }
 0x20d   :  { %v532_v27 = vadd.f32 %v968_v23, %v1385_v21  ;;  %v971_v28 = vadd.f32 %v970_v26, %v969_v62 }
 0x20f   :  { %v535_v63 = vadd.f32 %v971_v28, %v1385_v21  ;;  %v1390_v29 = vadd.f32 %v532_v27, %v1288_v24 }
 0x211   :  { %v972_v30 = vpop.f32.mrb[4].mxu1  ;;  %610 = vadd.xlane.f32.xlu0 %v1390_v29  ;;  %v1394_v33 = vadd.f32 %v535_v63, %v1290_v25  ;;  %v659_v25 = vmul.f32 %v1390_v29, %v1390_v29 }
 0x212   :  { %v973_v36 = vpop.f32.mrb[5].mxu1 }
 0x213   :  { %v974_v39 = vadd.f32 %v973_v36, %v972_v30  ;;  %v975_v42 = vpop.f32.mrb[6].mxu1  ;;  %v660_v45 = vmul.f32 %v1394_v33, %v1394_v33 }
 0x214   :  { %v976_v48 = vpop.f32.mrb[7].mxu1 }
 0x215   :  { %v540_v51 = vadd.f32 %v974_v39, %v1385_v21  ;;  %v977_v52 = vadd.f32 %v976_v48, %v975_v42  ;;  %677 = vadd.xlane.f32.xlu1 %v660_v45  ;;  %612 = vadd.xlane.f32.xlu0 %v1394_v33 }
 0x217   :  { %v543_v24 = vadd.f32 %v977_v52, %v1385_v21  ;;  %v1402_v53 = vadd.f32 %v540_v51, %v1295_v31 }
 0x219   :  { %v978_v54 = vpop.f32.mrb[8].mxu1  ;;  %614 = vadd.xlane.f32.xlu1 %v1402_v53  ;;  %675 = vadd.xlane.f32.xlu0 %v659_v25  ;;  %v1408_v58 = vadd.f32 %v543_v24, %v1297_v32  ;;  %v661_v59 = vmul.f32 %v1402_v53, %v1402_v53 }
 0x21a   :  { %v979_v55 = vpop.f32.mrb[9].mxu1 }
 0x21b   :  { %v980_v56 = vadd.f32 %v979_v55, %v978_v54  ;;  %v981_v57 = vpop.f32.mrb[10].mxu1  ;;  %v662_v1 = vmul.f32 %v1408_v58, %v1408_v58 }
 0x21c   :  { %v982_v60 = vpop.f32.mrb[11].mxu1 }
 0x21d   :  { %v548_v31 = vadd.f32 %v980_v56, %v1385_v21  ;;  %v983_v61 = vadd.f32 %v982_v60, %v981_v57  ;;  %616 = vadd.xlane.f32.xlu1 %v1408_v58  ;;  %679 = vadd.xlane.f32.xlu0 %v661_v59 }
 0x21f   :  { %v551_v0 = vadd.f32 %v983_v61, %v1385_v21  ;;  %v1418_v2 = vadd.f32 %v548_v31, %v1302_v34 }
 0x221   :  { %v984_v32 = vpop.f32.mrb[12].mxu1  ;;  %681 = vadd.xlane.f32.xlu1 %v662_v1  ;;  %618 = vadd.xlane.f32.xlu0 %v1418_v2  ;;  %v1422_v6 = vadd.f32 %v551_v0, %v1304_v35  ;;  %v663_v7 = vmul.f32 %v1418_v2, %v1418_v2 }
 0x222   :  { %v985_v3 = vpop.f32.mrb[13].mxu1 }
 0x223   :  { %v986_v4 = vadd.f32 %v985_v3, %v984_v32  ;;  %v987_v5 = vpop.f32.mrb[14].mxu1  ;;  %v664_v11 = vmul.f32 %v1422_v6, %v1422_v6 }
 0x224   :  { %v988_v8 = vpop.f32.mrb[15].mxu1 }
 0x225   :  { %v556_v9 = vadd.f32 %v986_v4, %v1385_v21  ;;  %v989_v10 = vadd.f32 %v988_v8, %v987_v5  ;;  %620 = vadd.xlane.f32.xlu1 %v1422_v6  ;;  %683 = vadd.xlane.f32.xlu0 %v663_v7 }
 0x227   :  { %v559_v34 = vadd.f32 %v989_v10, %v1385_v21  ;;  %v1432_v12 = vadd.f32 %v556_v9, %v1309_v37 }
 0x229   :  { %v990_v35 = vpop.f32.mrb[16].mxu1  ;;  %685 = vadd.xlane.f32.xlu1 %v664_v11  ;;  %622 = vadd.xlane.f32.xlu0 %v1432_v12  ;;  %v1436_v16 = vadd.f32 %v559_v34, %v1311_v38  ;;  %v665_v17 = vmul.f32 %v1432_v12, %v1432_v12 }
 0x22a   :  { %v991_v13 = vpop.f32.mrb[17].mxu1 }
 0x22b   :  { %v992_v14 = vadd.f32 %v991_v13, %v990_v35  ;;  %v993_v15 = vpop.f32.mrb[18].mxu1  ;;  %v666_v22 = vmul.f32 %v1436_v16, %v1436_v16 }
 0x22c   :  { %v994_v18 = vpop.f32.mrb[19].mxu1 }
 0x22d   :  { %v564_v19 = vadd.f32 %v992_v14, %v1385_v21  ;;  %v995_v20 = vadd.f32 %v994_v18, %v993_v15  ;;  %624 = vadd.xlane.f32.xlu1 %v1436_v16  ;;  %687 = vadd.xlane.f32.xlu0 %v665_v17 }
 0x22f   :  { %v567_v37 = vadd.f32 %v995_v20, %v1385_v21  ;;  %v1446_v23 = vadd.f32 %v564_v19, %v1316_v40 }
 0x231   :  { %v996_v38 = vpop.f32.mrb[20].mxu1  ;;  %689 = vadd.xlane.f32.xlu1 %v666_v22  ;;  %626 = vadd.xlane.f32.xlu0 %v1446_v23  ;;  %v1450_v28 = vadd.f32 %v567_v37, %v1318_v41  ;;  %v667_v63 = vmul.f32 %v1446_v23, %v1446_v23 }
 0x232   :  { %v997_v62 = vpop.f32.mrb[21].mxu1 }
 0x233   :  { %v998_v26 = vadd.f32 %v997_v62, %v996_v38  ;;  %v999_v27 = vpop.f32.mrb[22].mxu1  ;;  %v668_v42 = vmul.f32 %v1450_v28, %v1450_v28 }
 0x234   :  { %v1000_v30 = vpop.f32.mrb[23].mxu1 }
 0x235   :  { %v572_v36 = vadd.f32 %v998_v26, %v1385_v21  ;;  %v1001_v39 = vadd.f32 %v1000_v30, %v999_v27  ;;  %628 = vadd.xlane.f32.xlu1 %v1450_v28  ;;  %691 = vadd.xlane.f32.xlu0 %v667_v63 }
 0x237   :  { %v575_v40 = vadd.f32 %v1001_v39, %v1385_v21  ;;  %v1460_v45 = vadd.f32 %v572_v36, %v1323_v43 }
 0x239   :  { %v1002_v41 = vpop.f32.mrb[24].mxu1  ;;  %693 = vadd.xlane.f32.xlu1 %v668_v42  ;;  %630 = vadd.xlane.f32.xlu0 %v1460_v45  ;;  %v1464_v24 = vadd.f32 %v575_v40, %v1325_v44  ;;  %v669_v25 = vmul.f32 %v1460_v45, %v1460_v45 }
 0x23a   :  { %v1003_v48 = vpop.f32.mrb[25].mxu1 }
 0x23b   :  { %v1004_v51 = vadd.f32 %v1003_v48, %v1002_v41  ;;  %v1005_v52 = vpop.f32.mrb[26].mxu1  ;;  %v670_v57 = vmul.f32 %v1464_v24, %v1464_v24 }
 0x23c   :  { %v1006_v54 = vpop.f32.mrb[27].mxu1 }
 0x23d   :  { %v580_v55 = vadd.f32 %v1004_v51, %v1385_v21  ;;  %v1007_v56 = vadd.f32 %v1006_v54, %v1005_v52  ;;  %632 = vadd.xlane.f32.xlu1 %v1464_v24  ;;  %695 = vadd.xlane.f32.xlu0 %v669_v25 }
 0x23f   :  { %v583_v43 = vadd.f32 %v1007_v56, %v1385_v21  ;;  %v1474_v59 = vadd.f32 %v580_v55, %v1330_v46 }
 0x241   :  { %v1008_v44 = vpop.f32.mrb[28].mxu1  ;;  %697 = vadd.xlane.f32.xlu1 %v670_v57  ;;  %634 = vadd.xlane.f32.xlu0 %v1474_v59  ;;  %v1478_v0 = vadd.f32 %v583_v43, %v1332_v47  ;;  %v671_v1 = vmul.f32 %v1474_v59, %v1474_v59 }
 0x242   :  { %v1009_v60 = vpop.f32.mrb[29].mxu1 }
 0x243   :  { %v1010_v31 = vadd.f32 %v1009_v60, %v1008_v44  ;;  %v1011_v61 = vpop.f32.mrb[30].mxu1  ;;  %v672_v5 = vmul.f32 %v1478_v0, %v1478_v0 }
 0x244   :  { %v1012_v32 = vpop.f32.mrb[31].mxu1 }
 0x245   :  { %v588_v3 = vadd.f32 %v1010_v31, %v1385_v21  ;;  %v1013_v4 = vadd.f32 %v1012_v32, %v1011_v61  ;;  %636 = vadd.xlane.f32.xlu1 %v1478_v0  ;;  %699 = vadd.xlane.f32.xlu0 %v671_v1 }
 0x247   :  { %v591_v46 = vadd.f32 %v1013_v4, %v1385_v21  ;;  %v1488_v7 = vadd.f32 %v588_v3, %v1337_v49 }
 0x249   :  { %701 = vadd.xlane.f32.xlu1 %v672_v5  ;;  %638 = vadd.xlane.f32.xlu0 %v1488_v7  ;;  %v1492_v47 = vadd.f32 %v591_v46, %v1339_v50  ;;  %v673_v8 = vmul.f32 %v1488_v7, %v1488_v7  ;;  %v1519_v5 = vld [vmem:[%s1637_s5] ss:$0 sm:$0xff]  ;;  %s1197_s5 = smov [#allocation8]  }
 0x24b   :  { %v674_v21 = vmul.f32 %v1492_v47, %v1492_v47 }
 0x24d   :  { %640 = vadd.xlane.f32.xlu1 %v1492_v47  ;;  %703 = vadd.xlane.f32.xlu0 %v673_v8 }
 0x251   :  { %705 = vadd.xlane.f32.xlu1 %v674_v21 }
 0x29e   :  { %v611_v9 = vpop.xlane.xlu0 %610 }
 0x29f   :  { %v643_v34 = vmul.f32 0.0078125, %v611_v9 }
 0x2a1   :  { %v723_v15 = vmul.f32 %v643_v34, %v643_v34 }
 0x2a2   :  { %v678_v10 = vpop.xlane.xlu1 %677  ;;  %v613_v49 = vpop.xlane.xlu0 %612 }
 0x2a3   :  { %v644_v11 = vmul.f32 0.0078125, %v613_v49  ;;  %v708_v35 = vmul.f32 0.0078125, %v678_v10  ;;  %v771_v10 = vsub.f32 %v1390_v29, %v643_v34 }
 0x2a5   :  { %v724_v13 = vmul.f32 %v644_v11, %v644_v11  ;;  %v772_v1 = vsub.f32 %v1394_v33, %v644_v11  ;;  %v1527_v11 = vld [vmem:[%s1638_s6] ss:$0 sm:$0xff]  ;;  %s902_s6 = sshll.u32 %s1197_s5, 4  ;;  %s903_s6 = int_to_ptr.vmem [resolvable:$true] %s902_s6 }
 0x2a6   :  { %v615_v14 = vpop.xlane.xlu1 %614  ;;  %v676_v50 = vpop.xlane.xlu0 %675  ;;  %s1161_s23 = scalar_lea.vmem %s903_s6, 2048  ;;  %p1166_p11 = scmp.lt.s32.totalorder %s903_s6, %s903_s6 }
 0x2a7   :  { %v740_v17 = vsub.f32 %v708_v35, %v724_v13  ;;  %v707_v18 = vmul.f32 0.0078125, %v676_v50  ;;  %v1499_v19 = vmul.f32 0.0078125, %v615_v14  ;;  %p1162_p10 = scmp.ne.s32.totalorder %s903_s6, %s1161_s23  ;;  %p1167_p12 = scmp.lt.s32.totalorder %s1161_s23, %s1161_s23 }
 0x2a9   :  { %v756_v20 = vmax.f32 %v740_v17, 0.0  ;;  %v739_v37 = vsub.f32 %v707_v18, %v723_v15  ;;  %v725_v30 = vmul.f32 %v1499_v19, %v1499_v19  ;;  %p1168_p13 = por %p1167_p12, %p1166_p11 }
 0x2aa   :  { %v617_v22 = vpop.xlane.xlu1 %616  ;;  %v680_v38 = vpop.xlane.xlu0 %679 }
 0x2ab   :  { %v788_v62 = vadd.f32 1e-05, %v756_v20  ;;  %v755_v26 = vmax.f32 %v739_v37, 0.0  ;;  %v1501_v27 = vmul.f32 0.0078125, %v617_v22  ;;  %v709_v63 = vmul.f32 0.0078125, %v680_v38  ;;  %p1169_p0 = pnand %p1168_p13, %p1162_p10 }
 0x2ac   :  { %v773_v38 = vsub.f32 %v1402_v53, %v1499_v19 }
 0x2ad   :  { %1063 = vrsqrt.f32 %v788_v62  ;;  %v787_v36 = vadd.f32 1e-05, %v755_v26  ;;  %v741_v39 = vsub.f32 %v709_v63, %v725_v30  ;;  %v726_v41 = vmul.f32 %v1501_v27, %v1501_v27 }
 0x2ae   :  { %v682_v40 = vpop.xlane.xlu1 %681  ;;  %v619_v42 = vpop.xlane.xlu0 %618 }
 0x2af   :  { %1065 = vrsqrt.f32 %v787_v36  ;;  %v710_v48 = vmul.f32 0.0078125, %v682_v40  ;;  %v1507_v51 = vmul.f32 0.0078125, %v619_v42  ;;  %v757_v52 = vmax.f32 %v741_v39, 0.0 }
 0x2b1   :  { %v742_v25 = vsub.f32 %v710_v48, %v726_v41  ;;  %v789_v54 = vadd.f32 1e-05, %v757_v52  ;;  %v727_v57 = vmul.f32 %v1507_v51, %v1507_v51  ;;  %v774_v52 = vsub.f32 %v1408_v58, %v1501_v27 }
 0x2b2   :  { %v621_v55 = vpop.xlane.xlu1 %620  ;;  %v684_v56 = vpop.xlane.xlu0 %683  ;;  %v775_v58 = vsub.f32 %v1418_v2, %v1507_v51 }
 0x2b3   :  { %v758_v43 = vmax.f32 %v742_v25, 0.0  ;;  %v1511_v44 = vmul.f32 0.0078125, %v621_v55  ;;  %v711_v60 = vmul.f32 0.0078125, %v684_v56  ;;  %1067 = vrsqrt.f32 %v789_v54 }
 0x2b5   :  { %v790_v31 = vadd.f32 1e-05, %v758_v43  ;;  %v743_v61 = vsub.f32 %v711_v60, %v727_v57  ;;  %v728_v32 = vmul.f32 %v1511_v44, %v1511_v44  ;;  %v776_v2 = vsub.f32 %v1422_v6, %v1511_v44 }
 0x2b6   :  { %v686_v3 = vpop.xlane.xlu1 %685  ;;  %v623_v4 = vpop.xlane.xlu0 %622 }
 0x2b7   :  { %v1064_v46 = vpop.eup %1063  ;;  %1069 = vrsqrt.f32 %v790_v31  ;;  %v759_v8 = vmax.f32 %v743_v61, 0.0  ;;  %v712_v21 = vmul.f32 0.0078125, %v686_v3  ;;  %v1521_v9 = vmul.f32 0.0078125, %v623_v4 }
 0x2b8   :  { %v820_v49 = vmul.f32 %v1064_v46, %v772_v1 }
 0x2b9   :  { %v1066_v33 = vpop.eup %1065  ;;  %v791_v35 = vadd.f32 1e-05, %v759_v8  ;;  %v744_v13 = vsub.f32 %v712_v21, %v728_v32  ;;  %v729_v15 = vmul.f32 %v1521_v9, %v1521_v9  ;;  %v777_v44 = vsub.f32 %v1432_v12, %v1521_v9 }
 0x2ba   :  { %v843_v14 = vmul.f32 %v1519_v5, %v820_v49  ;;  %v819_v50 = vmul.f32 %v1066_v33, %v771_v10  ;;  %v625_v17 = vpop.xlane.xlu1 %624  ;;  %v688_v18 = vpop.xlane.xlu0 %687 }
 0x2bb   :  { %1071 = vrsqrt.f32 %v791_v35  ;;  %v760_v20 = vmax.f32 %v744_v13, 0.0  ;;  %v1532_v29 = vmul.f32 0.0078125, %v625_v17  ;;  %v713_v34 = vmul.f32 0.0078125, %v688_v18 }
 0x2bc   :  { %v866_v37 = vadd.f32 %v1527_v11, %v843_v14  ;;  %v842_v22 = vmul.f32 %v1519_v5, %v819_v50 }
 0x2bd   :  { %v792_v62 = vadd.f32 1e-05, %v760_v20  ;;  %v745_v26 = vsub.f32 %v713_v34, %v729_v15  ;;  %v1068_v63 = vpop.eup %1067  ;;  %v730_v36 = vmul.f32 %v1532_v29, %v1532_v29  ;;  %v778_v12 = vsub.f32 %v1436_v16, %v1532_v29 }
 0x2be   :  { %882 = vst [vmem:[#allocation8 + $0x8] sm:$0xff] %v866_v37  ;;  %v865_v30 = vadd.f32 %v1527_v11, %v842_v22  ;;  %v690_v39 = vpop.xlane.xlu1 %689  ;;  %v627_v40 = vpop.xlane.xlu0 %626  ;;  %v821_v42 = vmul.f32 %v1068_v63, %v773_v38 }
 0x2bf   :  { %1073 = vrsqrt.f32 %v792_v62  ;;  %v761_v41 = vmax.f32 %v745_v26, 0.0  ;;  %v714_v48 = vmul.f32 0.0078125, %v690_v39  ;;  %v1543_v53 = vmul.f32 0.0078125, %v627_v40 }
 0x2c0   :  { %881 = vst [vmem:[#allocation8] sm:$0xff] %v865_v30  ;;  %v844_v25 = vmul.f32 %v1519_v5, %v821_v42 }
 0x2c1   :  { %v1070_v19 = vpop.eup %1069  ;;  %v793_v54 = vadd.f32 1e-05, %v761_v41  ;;  %v746_v55 = vsub.f32 %v714_v48, %v730_v36  ;;  %v731_v27 = vmul.f32 %v1543_v53, %v1543_v53  ;;  %v779_v29 = vsub.f32 %v1446_v23, %v1543_v53 }
 0x2c2   :  { %v822_v56 = vmul.f32 %v1070_v19, %v774_v52  ;;  %v629_v43 = vpop.xlane.xlu1 %628  ;;  %v692_v57 = vpop.xlane.xlu0 %691  ;;  %v867_v60 = vadd.f32 %v1527_v11, %v844_v25 }
 0x2c3   :  { %1075 = vrsqrt.f32 %v793_v54  ;;  %v762_v31 = vmax.f32 %v746_v55, 0.0  ;;  %v1547_v61 = vmul.f32 0.0078125, %v629_v43  ;;  %v715_v32 = vmul.f32 0.0078125, %v692_v57 }
 0x2c4   :  { %v845_v1 = vmul.f32 %v1519_v5, %v822_v56  ;;  %883 = vst [vmem:[#allocation8 + $0x10] sm:$0xff] %v867_v60 }
 0x2c5   :  { %v1072_v3 = vpop.eup %1071  ;;  %v794_v4 = vadd.f32 1e-05, %v762_v31  ;;  %v747_v21 = vsub.f32 %v715_v32, %v731_v27  ;;  %v732_v33 = vmul.f32 %v1547_v61, %v1547_v61 }
 0x2c6   :  { %v868_v46 = vadd.f32 %v1527_v11, %v845_v1  ;;  %v823_v8 = vmul.f32 %v1072_v3, %v775_v58  ;;  %v694_v10 = vpop.xlane.xlu1 %693  ;;  %v631_v49 = vpop.xlane.xlu0 %630 }
 0x2c7   :  { %1077 = vrsqrt.f32 %v794_v4  ;;  %v716_v35 = vmul.f32 0.0078125, %v694_v10  ;;  %v1557_v13 = vmul.f32 0.0078125, %v631_v49  ;;  %v763_v14 = vmax.f32 %v747_v21, 0.0 }
 0x2c8   :  { %884 = vst [vmem:[#allocation8 + $0x18] sm:$0xff] %v868_v46  ;;  %v846_v51 = vmul.f32 %v1519_v5, %v823_v8 }
 0x2c9   :  { %v1074_v50 = vpop.eup %1073  ;;  %v748_v15 = vsub.f32 %v716_v35, %v732_v33  ;;  %v795_v20 = vadd.f32 1e-05, %v763_v14  ;;  %v733_v38 = vmul.f32 %v1557_v13, %v1557_v13 }
 0x2ca   :  { %v869_v17 = vadd.f32 %v1527_v11, %v846_v51  ;;  %v824_v18 = vmul.f32 %v1074_v50, %v776_v2  ;;  %v633_v34 = vpop.xlane.xlu1 %632  ;;  %v696_v37 = vpop.xlane.xlu0 %695  ;;  %v780_v51 = vsub.f32 %v1450_v28, %v1547_v61 }
 0x2cb   :  { %v764_v22 = vmax.f32 %v748_v15, 0.0  ;;  %v1565_v62 = vmul.f32 0.0078125, %v633_v34  ;;  %v717_v26 = vmul.f32 0.0078125, %v696_v37  ;;  %1079 = vrsqrt.f32 %v795_v20 }
 0x2cc   :  { %885 = vst [vmem:[#allocation8 + $0x20] sm:$0xff] %v869_v17  ;;  %v847_v6 = vmul.f32 %v1519_v5, %v824_v18 }
 0x2cd   :  { %v1076_v63 = vpop.eup %1075  ;;  %v796_v30 = vadd.f32 1e-05, %v764_v22  ;;  %v749_v36 = vsub.f32 %v717_v26, %v733_v38  ;;  %v734_v42 = vmul.f32 %v1565_v62, %v1565_v62  ;;  %v781_v26 = vsub.f32 %v1460_v45, %v1557_v13 }
 0x2ce   :  { %v870_v39 = vadd.f32 %v1527_v11, %v847_v6  ;;  %v825_v40 = vmul.f32 %v1076_v63, %v777_v44  ;;  %v698_v41 = vpop.xlane.xlu1 %697  ;;  %v635_v48 = vpop.xlane.xlu0 %634 }
 0x2cf   :  { %1081 = vrsqrt.f32 %v796_v30  ;;  %v765_v52 = vmax.f32 %v749_v36, 0.0  ;;  %v718_v19 = vmul.f32 0.0078125, %v698_v41  ;;  %v1573_v25 = vmul.f32 0.0078125, %v635_v48 }
 0x2d0   :  { %886 = vst [vmem:[#allocation8 + $0x28] sm:$0xff] %v870_v39  ;;  %v848_v9 = vmul.f32 %v1519_v5, %v825_v40  ;;  %v782_v41 = vsub.f32 %v1464_v24, %v1565_v62 }
 0x2d1   :  { %v1078_v54 = vpop.eup %1077  ;;  %v797_v55 = vadd.f32 1e-05, %v765_v52  ;;  %v750_v56 = vsub.f32 %v718_v19, %v734_v42  ;;  %v735_v60 = vmul.f32 %v1573_v25, %v1573_v25 }
 0x2d2   :  { %v871_v43 = vadd.f32 %v1527_v11, %v848_v9  ;;  %v826_v57 = vmul.f32 %v1078_v54, %v778_v12  ;;  %v637_v31 = vpop.xlane.xlu1 %636  ;;  %v700_v1 = vpop.xlane.xlu0 %699 }
 0x2d3   :  { %1083 = vrsqrt.f32 %v797_v55  ;;  %v766_v58 = vmax.f32 %v750_v56, 0.0  ;;  %v1581_v27 = vmul.f32 0.0078125, %v637_v31  ;;  %v719_v32 = vmul.f32 0.0078125, %v700_v1 }
 0x2d4   :  { %887 = vst [vmem:[#allocation8 + $0x30] sm:$0xff] %v871_v43  ;;  %v849_v16 = vmul.f32 %v1519_v5, %v826_v57  ;;  %v783_v56 = vsub.f32 %v1474_v59, %v1573_v25 }
 0x2d5   :  { %v798_v3 = vadd.f32 1e-05, %v766_v58  ;;  %v751_v4 = vsub.f32 %v719_v32, %v735_v60  ;;  %v1080_v46 = vpop.eup %1079  ;;  %v736_v21 = vmul.f32 %v1581_v27, %v1581_v27  ;;  %v784_v60 = vsub.f32 %v1478_v0, %v1581_v27 }
 0x2d6   :  { %v872_v8 = vadd.f32 %v1527_v11, %v849_v16  ;;  %v702_v10 = vpop.xlane.xlu1 %701  ;;  %v639_v49 = vpop.xlane.xlu0 %638  ;;  %v827_v33 = vmul.f32 %v1080_v46, %v779_v29 }
 0x2d7   :  { %1085 = vrsqrt.f32 %v798_v3  ;;  %v767_v35 = vmax.f32 %v751_v4, 0.0  ;;  %v720_v2 = vmul.f32 0.0078125, %v702_v10  ;;  %v657_v14 = vmul.f32 0.0078125, %v639_v49 }
 0x2d8   :  { %888 = vst [vmem:[#allocation8 + $0x38] sm:$0xff] %v872_v8  ;;  %v850_v53 = vmul.f32 %v1519_v5, %v827_v33 }
 0x2d9   :  { %v1082_v23 = vpop.eup %1081  ;;  %v799_v50 = vadd.f32 1e-05, %v767_v35  ;;  %v752_v15 = vsub.f32 %v720_v2, %v736_v21  ;;  %v737_v28 = vmul.f32 %v657_v14, %v657_v14  ;;  %v785_v25 = vsub.f32 %v1488_v7, %v657_v14 }
 0x2da   :  { %v828_v17 = vmul.f32 %v1082_v23, %v780_v51  ;;  %v641_v18 = vpop.xlane.xlu1 %640  ;;  %v704_v20 = vpop.xlane.xlu0 %703  ;;  %v873_v34 = vadd.f32 %v1527_v11, %v850_v53 }
 0x2db   :  { %1087 = vrsqrt.f32 %v799_v50  ;;  %v768_v37 = vmax.f32 %v752_v15, 0.0  ;;  %v658_v22 = vmul.f32 0.0078125, %v641_v18  ;;  %v721_v61 = vmul.f32 0.0078125, %v704_v20 }
 0x2dc   :  { %v851_v38 = vmul.f32 %v1519_v5, %v828_v17  ;;  %889 = vst [vmem:[#allocation8 + $0x40] sm:$0xff] %v873_v34 }
 0x2dd   :  { %v1084_v6 = vpop.eup %1083  ;;  %v800_v44 = vadd.f32 1e-05, %v768_v37  ;;  %v753_v36 = vsub.f32 %v721_v61, %v737_v28  ;;  %v738_v40 = vmul.f32 %v658_v22, %v658_v22  ;;  %v786_v4 = vsub.f32 %v1492_v47, %v658_v22 }
 0x2de   :  { %v874_v63 = vadd.f32 %v1527_v11, %v851_v38  ;;  %v829_v30 = vmul.f32 %v1084_v6, %v781_v26  ;;  %v706_v39 = vpop.xlane.xlu1 %705 }
 0x2df   :  { %1089 = vrsqrt.f32 %v800_v44  ;;  %v722_v42 = vmul.f32 0.0078125, %v706_v39  ;;  %v769_v45 = vmax.f32 %v753_v36, 0.0 }
 0x2e0   :  { %890 = vst [vmem:[#allocation8 + $0x48] sm:$0xff] %v874_v63  ;;  %v852_v48 = vmul.f32 %v1519_v5, %v829_v30 }
 0x2e1   :  { %v1086_v13 = vpop.eup %1085  ;;  %v754_v52 = vsub.f32 %v722_v42, %v738_v40  ;;  %v801_v9 = vadd.f32 1e-05, %v769_v45 }
 0x2e2   :  { %v875_v19 = vadd.f32 %v1527_v11, %v852_v48  ;;  %v830_v12 = vmul.f32 %v1086_v13, %v782_v41 }
 0x2e3   :  { %v770_v54 = vmax.f32 %v754_v52, 0.0  ;;  %1091 = vrsqrt.f32 %v801_v9 }
 0x2e4   :  { %891 = vst [vmem:[#allocation8 + $0x50] sm:$0xff] %v875_v19  ;;  %v853_v55 = vmul.f32 %v1519_v5, %v830_v12 }
 0x2e5   :  { %v1088_v43 = vpop.eup %1087  ;;  %v802_v57 = vadd.f32 1e-05, %v770_v54 }
 0x2e6   :  { %v876_v24 = vadd.f32 %v1527_v11, %v853_v55  ;;  %v831_v62 = vmul.f32 %v1088_v43, %v783_v56 }
 0x2e7   :  { %1093 = vrsqrt.f32 %v802_v57 }
 0x2e8   :  { %892 = vst [vmem:[#allocation8 + $0x58] sm:$0xff] %v876_v24  ;;  %v854_v31 = vmul.f32 %v1519_v5, %v831_v62 }
 0x2e9   :  { %v1090_v1 = vpop.eup %1089 }
 0x2ea   :  { %v877_v58 = vadd.f32 %v1527_v11, %v854_v31  ;;  %v832_v32 = vmul.f32 %v1090_v1, %v784_v60 }
 0x2ec   :  { %893 = vst [vmem:[#allocation8 + $0x60] sm:$0xff] %v877_v58  ;;  %v855_v59 = vmul.f32 %v1519_v5, %v832_v32 }
 0x2ed   :  { %v1092_v16 = vpop.eup %1091 }
 0x2ee   :  { %v878_v29 = vadd.f32 %v1527_v11, %v855_v59  ;;  %v833_v3 = vmul.f32 %v1092_v16, %v785_v25 }
 0x2f0   :  { %894 = vst [vmem:[#allocation8 + $0x68] sm:$0xff] %v878_v29  ;;  %v856_v0 = vmul.f32 %v1519_v5, %v833_v3 }
 0x2f1   :  { %v1094_v46 = vpop.eup %1093 }
 0x2f2   :  { %v834_v27 = vmul.f32 %v1094_v46, %v786_v4  ;;  %v879_v8 = vadd.f32 %v1527_v11, %v856_v0 }
 0x2f4   :  { %v857_v21 = vmul.f32 %v1519_v5, %v834_v27  ;;  %895 = vst [vmem:[#allocation8 + $0x70] sm:$0xff] %v879_v8 }
 0x2f6   :  { %v880_v7 = vadd.f32 %v1527_v11, %v857_v21 }
 0x2f8   :  { %896 = vst [vmem:[#allocation8 + $0x78] sm:$0xff] %v880_v7 }
 0x2f9   :  { %1172 = shalt.err (!%p1169_p0)
}
 0x2fa   :  { %s1173_s25 = scalar_lea.hbm %s1639_s7, 2048 }
 0x2fb   :  { %p1174_p1 = scmp.ne.s32.totalorder %s1639_s7, %s1173_s25  ;;  %p1177_p2 = scmp.lt.u32.totalorder %s1173_s25, %s1639_s7 }
 0x2fd   :  { %p1179_p3 = pnand %p1177_p2, %p1174_p1 }
 0x2ff   :  { %1182 = shalt.err (!%p1179_p3)
}
 0x300   :  { %908 = dma.vmem_to_hbm [thread:$0]  %s903_s6, 2048, %s1639_s7, [#allocation4], %s1191_s13, %s1191_s13, %s1192_s14  }
 0x301   :  { %1187 = dma.done.wait [#allocation4], 2048  }
 0x302   :  { %1188 = vsyncadd [#allocation4], 4294965248 }
 0x303   :  { %912 = vsyncpa [#allocation3], 1 }
 0x304   :  { %913 = vsyncpa [#allocation6], 1 }
 0x305   :  { %914 = vsyncpa [#allocation4], 1 }

</bundles_post_ra>
